<compile_context>
chip_gen: v6e
topology: v6e:2x2x1
jax: 0.10.0
libtpu: 0.0.40
codegen_flags: <defaults>
</compile_context>

<pallas_src>
import functools

import jax
import jax.numpy as jnp
import numpy as np
from jax.experimental import pallas as pl
from jax.experimental.pallas import tpu as pltpu


# ----------------------------- Pallas kernel ---------------------------------
def objective_kernel(xt_ref, wstk_ref, m_ref, bw_ref, o_ref, *, H):
    x_t  = xt_ref[...]        # (x_dim, Bt)   batch on the lane axis
    Wstk = wstk_ref[...]      # (2H, x_dim)   [W1^T ; W1^T A]
    M    = m_ref[...]         # (nv, H)       (V Bm^T) W1
    b1   = bw_ref[0:H, :]     # (H, 1)
    w2l  = bw_ref[H:2 * H, :] # (H, 1)        W2[:, -1]

    # Z = [W1^T x^T ; W1^T A x^T]                                  (2H, Bt)
    Z = jnp.dot(Wstk, x_t, preferred_element_type=jnp.float32)

    # h = tanh(W1^T x^T + b1);  s = (1 - h^2) * W2[:, -1]          (H, Bt)
    h = jnp.tanh(Z[0:H, :] + b1)
    s = (1.0 - h * h) * w2l

    # row[b] = (A x_b)^T W1 s_b  — sublane reduce over H (XLU)     (1, Bt)
    row = jnp.sum(Z[H:2 * H, :] * s, axis=0, keepdims=True)

    # cand[v, b] = (V Bm^T W1)[v] . s[:, b] + row[b]               (nv, Bt)
    cand = jnp.dot(M, s, preferred_element_type=jnp.float32) + row

    # phidot = min over vertices — sublane reduce (XLU)            (1, Bt)
    o_ref[...] = jnp.min(cand, axis=0, keepdims=True)


# ------------------------------- wrapper --------------------------------------
def objective_pallas(x, V, A, Bm, W1, b1, W2, *, b_tile=512):
    B, x_dim = x.shape
    H = W1.shape[1]
    nv = V.shape[0]

    # ---- wrapper-side (x-independent) precompute: free XLA ops ----
    xdot_u = V @ Bm.T                                        # (nv, x_dim)
    M      = xdot_u @ W1                                     # (nv, H)
    Wstk   = jnp.concatenate([W1.T, W1.T @ A], axis=0)       # (2H, x_dim)
    bw     = jnp.concatenate([b1.reshape(H, 1),
                              W2[:, -1].reshape(H, 1)], axis=0)   # (2H, 1)

    # batch on lanes; clamp the tile so tiny batches are not over-padded
    b_tile = int(max(128, min(b_tile, ((B + 127) // 128) * 128)))
    n_tiles = pl.cdiv(B, b_tile)
    B_pad = n_tiles * b_tile

    x_t = x.T                                                # (x_dim, B)
    if B_pad != B:
        x_t = jnp.pad(x_t, ((0, 0), (0, B_pad - B)))

    def full_spec(shape):
        # grid-invariant operand: same block every step, resident in VMEM
        return pl.BlockSpec(shape, lambda i: (0, 0),
                            memory_space=pltpu.MemorySpace.VMEM)

    out_t = pl.pallas_call(
        functools.partial(objective_kernel, H=H),
        out_shape=jax.ShapeDtypeStruct((1, B_pad), jnp.float32),
        grid=(n_tiles,),
        in_specs=[
            pl.BlockSpec((x_dim, b_tile), lambda i: (0, i),
                         memory_space=pltpu.MemorySpace.VMEM),   # x^T tile
            full_spec((2 * H, x_dim)),   # Wstk = [W1^T ; W1^T A]
            full_spec((nv, H)),          # M = (V Bm^T) W1
            full_spec((2 * H, 1)),       # bw = [b1 ; W2[:, -1]]
        ],
        out_specs=pl.BlockSpec((1, b_tile), lambda i: (0, i),
                               memory_space=pltpu.MemorySpace.VMEM),
        compiler_params=pltpu.CompilerParams(
            dimension_semantics=("parallel",)),
    )(x_t, Wstk, M, bw)

    # back to the PyTorch (B, 1) convention
    return out_t[:, :B].T


# ------------------------ pure-JAX reference (mirrors PyTorch) ----------------
def make_ref_fn(V, A, Bm, W1, b1, W2, x_dim, u_dim):
    def uvertices_fn(x):
        return jnp.broadcast_to(V, (x.shape[0],) + V.shape)

    def xdot_fn(X, U):
        return X @ A.T + U @ Bm.T

    def phi_fn(x):
        return jnp.tanh(x @ W1 + b1) @ W2

    def forward(x):
        ulv = uvertices_fn(x)                                    # (B, nv, u_dim)
        nv = ulv.shape[1]
        U = ulv.reshape(-1, u_dim)
        X = jnp.repeat(x[:, None, :], nv, axis=1).reshape(-1, x_dim)
        xdot = xdot_fn(X, U)
        grad_phi = jax.grad(lambda xx: jnp.sum(phi_fn(xx)[:, -1]))(x)
        grad_phi = jnp.repeat(grad_phi[:, None, :], nv, axis=1).reshape(-1, x_dim)
        cand = jnp.sum(xdot * grad_phi, axis=-1).reshape(-1, nv)
        return jnp.min(cand, axis=1).reshape(-1, 1)

    return forward


# ---------------------------------- main --------------------------------------
if __name__ == "__main__":
    x_dim, u_dim, H, P = 4, 2, 16, 3
    n_vertices = 4  # vertices of a box in u-space (2^u_dim)

    key = jax.random.PRNGKey(0)
    kx, ka, kb, kw1, kb1, kw2, kx2 = jax.random.split(key, 7)

    # control-limit box vertices (deterministic): {-1, +1}^u_dim
    V = jnp.array([[-1.0, -1.0], [-1.0, 1.0], [1.0, -1.0], [1.0, 1.0]],
                  dtype=jnp.float32)                       # (n_vertices, u_dim)

    A  = 0.5 * jax.random.normal(ka,  (x_dim, x_dim), dtype=jnp.float32)
    Bm = 0.5 * jax.random.normal(kb,  (x_dim, u_dim), dtype=jnp.float32)
    W1 = 0.5 * jax.random.normal(kw1, (x_dim, H),     dtype=jnp.float32)
    b1 = 0.1 * jax.random.normal(kb1, (1, H),         dtype=jnp.float32)
    W2 = 0.5 * jax.random.normal(kw2, (H, P),         dtype=jnp.float32)

    ref_fn = make_ref_fn(V, A, Bm, W1, b1, W2, x_dim, u_dim)

    # small batch (single tile, padded)
    B = 8
    x = jax.random.normal(kx, (B, x_dim), dtype=jnp.float32)
    out = jax.block_until_ready(objective_pallas(x, V, A, Bm, W1, b1, W2))
    np.testing.assert_allclose(np.asarray(out), np.asarray(ref_fn(x)),
                               rtol=1e-5, atol=1e-5)

    # larger batch with an explicit small tile to exercise the multi-tile grid
    B2 = 260
    x2 = jax.random.normal(kx2, (B2, x_dim), dtype=jnp.float32)
    out2 = jax.block_until_ready(
        objective_pallas(x2, V, A, Bm, W1, b1, W2, b_tile=128))
    np.testing.assert_allclose(np.asarray(out2), np.asarray(ref_fn(x2)),
                               rtol=1e-5, atol=1e-5)

    print("KERNEL_OK")
</pallas_src>

<mosaic_0001>
module attributes {stable_mosaic.version = 11 : i64} {
  func.func @objective_kernel(%arg0: i32, %arg1: memref<4x128xf32, #tpu.memory_space<vmem>>, %arg2: memref<32x4xf32, #tpu.memory_space<vmem>>, %arg3: memref<4x16xf32, #tpu.memory_space<vmem>>, %arg4: memref<32x1xf32, #tpu.memory_space<vmem>>, %arg5: memref<1x128xf32, #tpu.memory_space<vmem>>) attributes {dimension_semantics = [#tpu.dimension_semantics<parallel>], iteration_bounds = array<i64: 1>, scalar_prefetch = 0 : i64, scratch_operands = 0 : i64, tpu.core_type = #tpu.core_type<tc>, window_params = [{transform_indices = @transform_0, window_bounds = array<i64: 4, 128>}, {pipeline_mode = #tpu.pipeline_mode<synchronous>, transform_indices = @transform_1, window_bounds = array<i64: 32, 4>}, {pipeline_mode = #tpu.pipeline_mode<synchronous>, transform_indices = @transform_2, window_bounds = array<i64: 4, 16>}, {pipeline_mode = #tpu.pipeline_mode<synchronous>, transform_indices = @transform_3, window_bounds = array<i64: 32, 1>}, {transform_indices = @transform_4, window_bounds = array<i64: 1, 128>}]} {
    %c0 = arith.constant 0 : index
    %c0_0 = arith.constant 0 : index
    %0 = vector.load %arg1[%c0, %c0_0] : memref<4x128xf32, #tpu.memory_space<vmem>>, vector<4x128xf32>
    %c0_1 = arith.constant 0 : index
    %c0_2 = arith.constant 0 : index
    %1 = vector.load %arg2[%c0_1, %c0_2] : memref<32x4xf32, #tpu.memory_space<vmem>>, vector<32x4xf32>
    %c0_3 = arith.constant 0 : index
    %c0_4 = arith.constant 0 : index
    %2 = vector.load %arg3[%c0_3, %c0_4] : memref<4x16xf32, #tpu.memory_space<vmem>>, vector<4x16xf32>
    %c0_5 = arith.constant 0 : index
    %c0_6 = arith.constant 0 : index
    %3 = vector.load %arg4[%c0_5, %c0_6] : memref<32x1xf32, #tpu.memory_space<vmem>>, vector<16x1xf32>
    %c16 = arith.constant 16 : index
    %c0_7 = arith.constant 0 : index
    %4 = vector.load %arg4[%c16, %c0_7] : memref<32x1xf32, #tpu.memory_space<vmem>>, vector<16x1xf32>
    %cst = arith.constant dense<0.000000e+00> : vector<32x128xf32>
    %5 = tpu.matmul %1, %0, %cst {dimension_numbers = #tpu.dot_dimension_numbers<[1], [0], [0], [1], [0, 0, 1, 1], [], []>} : vector<32x4xf32>, vector<4x128xf32>, vector<32x128xf32> -> vector<32x128xf32>
    %6 = vector.extract_strided_slice %5 {offsets = [0, 0], sizes = [16, 128], strides = [1, 1]} : vector<32x128xf32> to vector<16x128xf32>
    %7 = vector.broadcast %3 : vector<16x1xf32> to vector<16x128xf32>
    %8 = arith.addf %6, %7 : vector<16x128xf32>
    %9 = math.tanh %8 : vector<16x128xf32>
    %10 = arith.mulf %9, %9 : vector<16x128xf32>
    %cst_8 = arith.constant 1.000000e+00 : f32
    %11 = vector.broadcast %cst_8 : f32 to vector<16x128xf32>
    %12 = arith.subf %11, %10 : vector<16x128xf32>
    %13 = vector.broadcast %4 : vector<16x1xf32> to vector<16x128xf32>
    %14 = arith.mulf %12, %13 : vector<16x128xf32>
    %15 = vector.extract_strided_slice %5 {offsets = [16, 0], sizes = [16, 128], strides = [1, 1]} : vector<32x128xf32> to vector<16x128xf32>
    %16 = arith.mulf %15, %14 : vector<16x128xf32>
    %cst_9 = arith.constant dense<0.000000e+00> : vector<128xf32>
    %17 = vector.multi_reduction <add>, %16, %cst_9 [0] : vector<16x128xf32> to vector<128xf32>
    %18 = vector.shape_cast %17 : vector<128xf32> to vector<1x128xf32>
    %cst_10 = arith.constant dense<0.000000e+00> : vector<4x128xf32>
    %19 = tpu.matmul %2, %14, %cst_10 {dimension_numbers = #tpu.dot_dimension_numbers<[1], [0], [0], [1], [0, 0, 1, 1], [], []>} : vector<4x16xf32>, vector<16x128xf32>, vector<4x128xf32> -> vector<4x128xf32>
    %20 = vector.broadcast %18 : vector<1x128xf32> to vector<4x128xf32>
    %21 = arith.addf %19, %20 : vector<4x128xf32>
    %cst_11 = arith.constant dense<0x7F800000> : vector<128xf32>
    %22 = vector.multi_reduction <minimumf>, %21, %cst_11 [0] : vector<4x128xf32> to vector<128xf32>
    %23 = vector.shape_cast %22 : vector<128xf32> to vector<1x128xf32>
    %c0_12 = arith.constant 0 : index
    %c0_13 = arith.constant 0 : index
    %24 = vector.load %arg5[%c0_12, %c0_13] : memref<1x128xf32, #tpu.memory_space<vmem>>, vector<1x128xf32>
    tpu.vector_store %arg5[%c0_12, %c0_13], %23 {strides = array<i32>} : memref<1x128xf32, #tpu.memory_space<vmem>>, vector<1x128xf32>,
    return
  }
  func.func @transform_0(%arg0: i32) -> (i32, i32) {
    %c0_i32 = arith.constant 0 : i32
    %c0_i32_0 = arith.constant 0 : i32
    return %c0_i32, %arg0 : i32, i32
  }
  func.func @transform_1(%arg0: i32) -> (i32, i32) {
    %c0_i32 = arith.constant 0 : i32
    %c0_i32_0 = arith.constant 0 : i32
    %c0_i32_1 = arith.constant 0 : i32
    return %c0_i32, %c0_i32_0 : i32, i32
  }
  func.func @transform_2(%arg0: i32) -> (i32, i32) {
    %c0_i32 = arith.constant 0 : i32
    %c0_i32_0 = arith.constant 0 : i32
    %c0_i32_1 = arith.constant 0 : i32
    return %c0_i32, %c0_i32_0 : i32, i32
  }
  func.func @transform_3(%arg0: i32) -> (i32, i32) {
    %c0_i32 = arith.constant 0 : i32
    %c0_i32_0 = arith.constant 0 : i32
    %c0_i32_1 = arith.constant 0 : i32
    return %c0_i32, %c0_i32_0 : i32, i32
  }
  func.func @transform_4(%arg0: i32) -> (i32, i32) {
    %c0_i32 = arith.constant 0 : i32
    %c0_i32_0 = arith.constant 0 : i32
    return %c0_i32, %arg0 : i32, i32
  }
}

</mosaic_0001>

<bundles_post_ra>
// kernel: tpu_custom_call.1
= control target key start
LH: loop header
LB: loop body
LE: loop exit
PB: predicated region body
PF: predicated region fallthrough
CT: control target
= control target key end

     0   :  { %vm41_vm0 = vcmask 1043456   ;;  %vm28_vm1 = vcmask 31744   ;;  %v326_v5 = vmov 0   ;;  %s395_s0 = inlined_call_operand.vmem [shape: f32[4,128], index: 0, kind: input, shape index: {}]   ;;  %s396_s1 = inlined_call_operand.vmem [shape: f32[32,4], index: 1, kind: input, shape index: {}]   ;;  %s397_s2 = inlined_call_operand.vmem [shape: f32[4,16], index: 2, kind: input, shape index: {}]   ;;  %s398_s3 = inlined_call_operand.vmem [shape: f32[32,1], index: 3, kind: input, shape index: {}]   ;;  %s399_s4 = inlined_call_operand.hbm [shape: f32[1,128], index: 4, kind: output, shape index: {}]  }
   0x1   :  { %v18_v0 = vld [vmem:[%s395_s0] sm:$0xf]  ;;  %v20_v2 = vld [vmem:[%s396_s1 + $0x8] sm:$0xff]  ;;  %v21_v3 = vld [vmem:[%s396_s1 + $0x10] sm:$0xff]  ;;  %298 = vset.pattern.permute.xlu0 %v326_v5 }
   0x2   :  { %v19_v1 = vld [vmem:[%s396_s1] sm:$0xff]  ;;  %279 = vmatprep.subr.msk.mxu0 %vm41_vm0, %v18_v0  ;;  %v25_v4 = vld [vmem:[%s398_s3 + $0x8] sm:$0xff]  ;;  %v27_v6 = vld [vmem:[%s398_s3 + $0x18] sm:$0xff] }
   0x3   :  { %281 = vmatprep.mubr.msk.f32.mxu0 %vm28_vm1, %v19_v1  ;;  %280 = vmatpush3.msk.msra.mxu0 %vm41_vm0, %v18_v0 }
   0x4   :  { %282 = vmatmul.mubr.msk.f32.vlgmr.msra.gmra.mxu0 %vm28_vm1, %v20_v2  ;;  %137 = vperm.xlu0 %298, %v25_v4  }
   0x5   :  { %9 = vsyncpa [#allocation3], 0  ;;  %284 = vmatprep.mubr.msk.f32.mxu0 %vm28_vm1, %v21_v3  ;;  %v22_v7 = vld [vmem:[%s396_s1 + $0x18] sm:$0xff]  ;;  %v24_v8 = vld [vmem:[%s398_s3] sm:$0xff]  ;;  %299 = vset.pattern.permute.xlu1 %v326_v5  ;;  %v327_v10 = vmov 0.0   ;;  %vm328_vm2 = vmmov 0  }
   0x6   :  { %155 = vperm.xlu1 %299, %v27_v6   ;;  %v26_v9 = vld [vmem:[%s398_s3 + $0x10] sm:$0xff]  ;;  %287 = vmatprep.subr.mxu1 %v327_v10  ;;  %v23_v29 = vld [vmem:[%s397_s2] sm:$0xf]  ;;  %vm169_vm3 = vcmask 130048   ;;  %s329_s2 = smov [#allocation2]  }
   0x7   :  { %291 = vmatprep.mubr.msk.f32.mxu1 %vm328_vm2, %v327_v10  ;;  %s257_s6 = sshll.u32 %s329_s2, 4  ;;  %s258_s6 = int_to_ptr.vmem [resolvable:$true] %s257_s6 }
   0x8   :  { %285 = vmatmul.mubr.msk.f32.gmra.mxu0 %vm28_vm1, %v22_v7  ;;  %132 = vperm.xlu0 %298, %v24_v8   ;;  %s304_s7 = scalar_lea.vmem %s258_s6, 16  ;;  %s308_s8 = scalar_lea.vmem %s258_s6, 32 }
   0x9   :  { %p305_p0 = scmp.ne.s32.totalorder %s258_s6, %s304_s7  ;;  %p309_p1 = scmp.lt.s32.totalorder %s258_s6, %s258_s6 }
   0xa   :  { %150 = vperm.xlu1 %299, %v26_v9   ;;  %p310_p2 = scmp.lt.s32.totalorder %s308_s8, %s304_s7 }
   0xc   :  { %p311_p3 = por %p310_p2, %p309_p1 }
   0xe   :  { %p312_p4 = pnand %p311_p3, %p305_p0 }
  0x7f   :  { %v138_v11 = vpop.permute.xlu0 %137 }
  0x81   :  { %v156_v18 = vpop.permute.xlu1 %155 }
  0x83   :  { %v133_v14 = vpop.permute.xlu0 %132 }
  0x85   :  { %v151_v26 = vpop.permute.xlu1 %150 }
  0xc4   :  { %v283_v12 = vpop.f32.mrf.mxu0 }
  0xc5   :  { %v141_v13 = vadd.f32 %v283_v12, %v138_v11 }
  0xc6   :  { %v111_v15 = vpop.f32.mrf.mxu0 }
  0xc7   :  { %300 = vtanh.f32 %v141_v13  ;;  %v140_v16 = vadd.f32 %v133_v14, %v111_v15 }
  0xc8   :  { %v286_v21 = vpop.f32.mrf.mxu0 }
  0xc9   :  { %302 = vtanh.f32 %v140_v16 }
  0xca   :  { %v121_v27 = vpop.f32.mrf.mxu0 }
  0xd4   :  { %v301_v17 = vpop.eup %300 }
  0xd5   :  { %v145_v19 = vmul.f32 %v301_v17, %v301_v17 }
  0xd6   :  { %v303_v20 = vpop.eup %302 }
  0xd7   :  { %v147_v22 = vsub.f32 1.0, %v145_v19  ;;  %v144_v23 = vmul.f32 %v303_v20, %v303_v20 }
  0xd9   :  { %v159_v24 = vmul.f32 %v156_v18, %v147_v22  ;;  %v146_v25 = vsub.f32 1.0, %v144_v23 }
  0xdb   :  { %v158_v28 = vmul.f32 %v151_v26, %v146_v25  ;;  %288 = vmatpush3.msra.mxu1 %v159_v24  ;;  %v161_v30 = vmul.f32 %v286_v21, %v159_v24 }
  0xdc   :  { %289 = vmatprep.subr.mxu1 %v327_v10 }
  0xdd   :  { %v160_v31 = vmul.f32 %v158_v28, %v121_v27  ;;  %290 = vmatpush3.msra.mxu1 %v158_v28 }
  0xde   :  { %292 = vmatmul.mubr.msk.f32.vlgmr.msra.gmra.mxu1 %vm169_vm3, %v23_v29 }
  0xdf   :  { %v162_v32 = vadd.f32 %v161_v30, %v160_v31 }
  0xe1   :  { %v163_v33 = vrot.slane %v162_v32, 4 }
  0xe3   :  { %v164_v34 = vadd.f32 %v163_v33, %v162_v32 }
  0xe5   :  { %v165_v35 = vrot.slane %v164_v34, 2 }
  0xe7   :  { %v166_v36 = vadd.f32 %v165_v35, %v164_v34 }
  0xe9   :  { %v167_v37 = vrot.slane %v166_v36, 1 }
  0xeb   :  { %v168_v38 = vadd.f32 %v167_v37, %v166_v36 }
 0x19e   :  { %v239_v39 = vpop.f32.mrf.mxu1 }
 0x19f   :  { %v240_v40 = vadd.f32 %v239_v39, %v168_v38 }
 0x1a0   :  { %v293_v41 = vpop.f32.mrf.mxu1 }
 0x1a1   :  { %v243_v42 = vsel %vm41_vm0, %v240_v40, inf }
 0x1a2   :  { %v244_v43 = vrot.slane %v243_v42, 4 }
 0x1a4   :  { %v245_v44 = vmin.f32 %v243_v42, %v244_v43 }
 0x1a6   :  { %v246_v45 = vrot.slane %v245_v44, 2 }
 0x1a8   :  { %v247_v46 = vmin.f32 %v245_v44, %v246_v45 }
 0x1aa   :  { %v248_v47 = vrot.slane %v247_v46, 1 }
 0x1ac   :  { %v249_v48 = vmin.f32 %v247_v46, %v248_v47 }
 0x1ae   :  { %250 = vst [vmem:[#allocation2] sm:$0x1] %v249_v48 }
 0x1af   :  { %315 = shalt.err (!%p312_p4)
}
 0x1b0   :  { %260 = dma.vmem_to_hbm [thread:$0]  %s258_s6, 16, %s399_s4, [#allocation3]  }
 0x1b1   :  { %324 = dma.done.wait [#allocation3], 16  }
 0x1b2   :  { %325 = vsyncadd [#allocation3], 4294967280 }
 0x1b3   :  { %264 = vsyncpa [#allocation3], 1 }

</bundles_post_ra>
